<compile_context>
chip_gen: v7x
topology: tpu7x:2x2x1
jax: 0.10.0
libtpu: 0.0.40
codegen_flags: <defaults>
</compile_context>

<pallas_src>
import jax
import jax.numpy as jnp
from jax import lax
from jax.experimental import pallas as pl
from jax.experimental.pallas import tpu as pltpu


def _upsample2x_kernel(x_ref, l_ref, r_ref, o_ref):
    """x_ref: [CB, H, W]; l_ref: [2H, H]; r_ref: [W, 2W]; o_ref: [CB, 2H, 2W]."""
    cb, h, w = x_ref.shape

    x = x_ref[...].astype(jnp.float32)          # [CB, H, W]
    l_mat = l_ref[...]                          # [2H, H]   (row-doubling, 0/1)
    r_mat = r_ref[...]                          # [W, 2W]   (col-doubling, 0/1)

    # --- W-doubling, fused over all CB planes: one lane-dense MXU matmul. ---
    # z[c*H + i, j] = x[c, i, j // 2]
    x2 = x.reshape(cb * h, w)
    z = jnp.dot(x2, r_mat, preferred_element_type=jnp.float32)   # [CB*H, 2W]

    # --- H-doubling per plane (static, unrolled; plain 2-D dots, no relayout). ---
    for c in range(cb):
        zc = z[c * h:(c + 1) * h, :]                              # [H, 2W]
        o_ref[c] = jnp.dot(l_mat, zc,
                           preferred_element_type=jnp.float32).astype(o_ref.dtype)


def upsample_nearest_2x(x):
    """NCHW nearest-neighbor 2x upsample == F.interpolate(x, scale_factor=2, 'nearest')."""
    n, c, h, w = x.shape
    nc = n * c
    xp = x.reshape(nc, h, w)

    # Channel-group size per grid step (amortizes per-grid-step overhead).
    cb = 1
    for cand in (8, 4, 2, 1):
        if nc % cand == 0:
            cb = cand
            break
    grid = (nc // cb,)

    # 0/1 replication matrices: (L @ plane @ R)[i, j] = plane[i // 2, j // 2].
    l_mat = (jnp.arange(2 * h, dtype=jnp.int32)[:, None] // 2
             == jnp.arange(h, dtype=jnp.int32)[None, :]).astype(jnp.float32)   # [2H, H]
    r_mat = (jnp.arange(2 * w, dtype=jnp.int32)[None, :] // 2
             == jnp.arange(w, dtype=jnp.int32)[:, None]).astype(jnp.float32)   # [W, 2W]

    itemsize = jnp.dtype(x.dtype).itemsize
    flops = 2 * nc * h * w * (2 * w) + 2 * nc * (2 * h) * h * (2 * w)
    bytes_accessed = (xp.size + nc * (2 * h) * (2 * w)) * itemsize \
        + grid[0] * (l_mat.size + r_mat.size) * 4

    out = pl.pallas_call(
        _upsample2x_kernel,
        out_shape=jax.ShapeDtypeStruct((nc, 2 * h, 2 * w), x.dtype),
        grid=grid,
        in_specs=[
            pl.BlockSpec((cb, h, w), lambda p: (p, 0, 0)),
            pl.BlockSpec((2 * h, h), lambda p: (0, 0)),
            pl.BlockSpec((w, 2 * w), lambda p: (0, 0)),
        ],
        out_specs=pl.BlockSpec((cb, 2 * h, 2 * w), lambda p: (p, 0, 0)),
        compiler_params=pltpu.CompilerParams(
            dimension_semantics=("parallel",)),
        cost_estimate=pl.CostEstimate(flops=flops, transcendentals=0,
                                      bytes_accessed=bytes_accessed),
    )(xp, l_mat, r_mat)

    return out.reshape(n, c, 2 * h, 2 * w)


def reference_nchw(x):
    """Pure-JAX reference for nearest 2x upsample (NCHW)."""
    return jnp.repeat(jnp.repeat(x, 2, axis=2), 2, axis=3)


if __name__ == "__main__":
    # Small shapes consistent with the module: batch=2, channels=4, spatial=16x16.
    N, C, H, W = 2, 4, 16, 16

    key = jax.random.PRNGKey(0)
    x = jax.random.normal(key, (N, C, H, W), jnp.float32)   # NCHW, like PyTorch

    out = jax.block_until_ready(upsample_nearest_2x(x))
    ref = jax.block_until_ready(reference_nchw(x))

    assert out.shape == (N, C, 2 * H, 2 * W)
    assert jnp.allclose(out, ref, atol=1e-5, rtol=1e-5), \
        f"max abs diff {jnp.max(jnp.abs(out - ref))}"

    print("KERNEL_OK")
</pallas_src>

<mosaic_0001>
module attributes {stable_mosaic.version = 11 : i64} {
  func.func @_upsample2x_kernel(%arg0: i32, %arg1: memref<8x16x16xf32, #tpu.memory_space<vmem>>, %arg2: memref<32x16xf32, #tpu.memory_space<vmem>>, %arg3: memref<16x32xf32, #tpu.memory_space<vmem>>, %arg4: memref<8x32x32xf32, #tpu.memory_space<vmem>>) attributes {dimension_semantics = [#tpu.dimension_semantics<parallel>], iteration_bounds = array<i64: 1>, scalar_prefetch = 0 : i64, scratch_operands = 0 : i64, tpu.core_type = #tpu.core_type<tc>, window_params = [{transform_indices = @transform_0, window_bounds = array<i64: 8, 16, 16>}, {pipeline_mode = #tpu.pipeline_mode<synchronous>, transform_indices = @transform_1, window_bounds = array<i64: 32, 16>}, {pipeline_mode = #tpu.pipeline_mode<synchronous>, transform_indices = @transform_2, window_bounds = array<i64: 16, 32>}, {transform_indices = @transform_3, window_bounds = array<i64: 8, 32, 32>}]} {
    %c0 = arith.constant 0 : index
    %c0_0 = arith.constant 0 : index
    %c0_1 = arith.constant 0 : index
    %0 = vector.load %arg1[%c0, %c0_0, %c0_1] : memref<8x16x16xf32, #tpu.memory_space<vmem>>, vector<8x16x16xf32>
    %c0_2 = arith.constant 0 : index
    %c0_3 = arith.constant 0 : index
    %1 = vector.load %arg2[%c0_2, %c0_3] : memref<32x16xf32, #tpu.memory_space<vmem>>, vector<32x16xf32>
    %c0_4 = arith.constant 0 : index
    %c0_5 = arith.constant 0 : index
    %2 = vector.load %arg3[%c0_4, %c0_5] : memref<16x32xf32, #tpu.memory_space<vmem>>, vector<16x32xf32>
    %3 = vector.shape_cast %0 : vector<8x16x16xf32> to vector<128x16xf32>
    %cst = arith.constant dense<0.000000e+00> : vector<128x32xf32>
    %4 = tpu.matmul %3, %2, %cst {dimension_numbers = #tpu.dot_dimension_numbers<[1], [0], [0], [1], [0, 0, 1, 1], [], []>} : vector<128x16xf32>, vector<16x32xf32>, vector<128x32xf32> -> vector<128x32xf32>
    %5 = vector.extract_strided_slice %4 {offsets = [0, 0], sizes = [16, 32], strides = [1, 1]} : vector<128x32xf32> to vector<16x32xf32>
    %cst_6 = arith.constant dense<0.000000e+00> : vector<32x32xf32>
    %6 = tpu.matmul %1, %5, %cst_6 {dimension_numbers = #tpu.dot_dimension_numbers<[1], [0], [0], [1], [0, 0, 1, 1], [], []>} : vector<32x16xf32>, vector<16x32xf32>, vector<32x32xf32> -> vector<32x32xf32>
    %c0_7 = arith.constant 0 : index
    %c0_8 = arith.constant 0 : index
    %c0_9 = arith.constant 0 : index
    %7 = vector.load %arg4[%c0_7, %c0_8, %c0_9] : memref<8x32x32xf32, #tpu.memory_space<vmem>>, vector<1x32x32xf32>
    %8 = vector.shape_cast %7 : vector<1x32x32xf32> to vector<32x32xf32>
    %9 = vector.shape_cast %6 : vector<32x32xf32> to vector<1x32x32xf32>
    tpu.vector_store %arg4[%c0_7, %c0_8, %c0_9], %9 {strides = array<i32>} : memref<8x32x32xf32, #tpu.memory_space<vmem>>, vector<1x32x32xf32>,
    %10 = vector.extract_strided_slice %4 {offsets = [16, 0], sizes = [16, 32], strides = [1, 1]} : vector<128x32xf32> to vector<16x32xf32>
    %cst_10 = arith.constant dense<0.000000e+00> : vector<32x32xf32>
    %11 = tpu.matmul %1, %10, %cst_10 {dimension_numbers = #tpu.dot_dimension_numbers<[1], [0], [0], [1], [0, 0, 1, 1], [], []>} : vector<32x16xf32>, vector<16x32xf32>, vector<32x32xf32> -> vector<32x32xf32>
    %c1 = arith.constant 1 : index
    %c0_11 = arith.constant 0 : index
    %c0_12 = arith.constant 0 : index
    %12 = vector.load %arg4[%c1, %c0_11, %c0_12] : memref<8x32x32xf32, #tpu.memory_space<vmem>>, vector<1x32x32xf32>
    %13 = vector.shape_cast %12 : vector<1x32x32xf32> to vector<32x32xf32>
    %14 = vector.shape_cast %11 : vector<32x32xf32> to vector<1x32x32xf32>
    tpu.vector_store %arg4[%c1, %c0_11, %c0_12], %14 {strides = array<i32>} : memref<8x32x32xf32, #tpu.memory_space<vmem>>, vector<1x32x32xf32>,
    %15 = vector.extract_strided_slice %4 {offsets = [32, 0], sizes = [16, 32], strides = [1, 1]} : vector<128x32xf32> to vector<16x32xf32>
    %cst_13 = arith.constant dense<0.000000e+00> : vector<32x32xf32>
    %16 = tpu.matmul %1, %15, %cst_13 {dimension_numbers = #tpu.dot_dimension_numbers<[1], [0], [0], [1], [0, 0, 1, 1], [], []>} : vector<32x16xf32>, vector<16x32xf32>, vector<32x32xf32> -> vector<32x32xf32>
    %c2 = arith.constant 2 : index
    %c0_14 = arith.constant 0 : index
    %c0_15 = arith.constant 0 : index
    %17 = vector.load %arg4[%c2, %c0_14, %c0_15] : memref<8x32x32xf32, #tpu.memory_space<vmem>>, vector<1x32x32xf32>
    %18 = vector.shape_cast %17 : vector<1x32x32xf32> to vector<32x32xf32>
    %19 = vector.shape_cast %16 : vector<32x32xf32> to vector<1x32x32xf32>
    tpu.vector_store %arg4[%c2, %c0_14, %c0_15], %19 {strides = array<i32>} : memref<8x32x32xf32, #tpu.memory_space<vmem>>, vector<1x32x32xf32>,
    %20 = vector.extract_strided_slice %4 {offsets = [48, 0], sizes = [16, 32], strides = [1, 1]} : vector<128x32xf32> to vector<16x32xf32>
    %cst_16 = arith.constant dense<0.000000e+00> : vector<32x32xf32>
    %21 = tpu.matmul %1, %20, %cst_16 {dimension_numbers = #tpu.dot_dimension_numbers<[1], [0], [0], [1], [0, 0, 1, 1], [], []>} : vector<32x16xf32>, vector<16x32xf32>, vector<32x32xf32> -> vector<32x32xf32>
    %c3 = arith.constant 3 : index
    %c0_17 = arith.constant 0 : index
    %c0_18 = arith.constant 0 : index
    %22 = vector.load %arg4[%c3, %c0_17, %c0_18] : memref<8x32x32xf32, #tpu.memory_space<vmem>>, vector<1x32x32xf32>
    %23 = vector.shape_cast %22 : vector<1x32x32xf32> to vector<32x32xf32>
    %24 = vector.shape_cast %21 : vector<32x32xf32> to vector<1x32x32xf32>
    tpu.vector_store %arg4[%c3, %c0_17, %c0_18], %24 {strides = array<i32>} : memref<8x32x32xf32, #tpu.memory_space<vmem>>, vector<1x32x32xf32>,
    %25 = vector.extract_strided_slice %4 {offsets = [64, 0], sizes = [16, 32], strides = [1, 1]} : vector<128x32xf32> to vector<16x32xf32>
    %cst_19 = arith.constant dense<0.000000e+00> : vector<32x32xf32>
    %26 = tpu.matmul %1, %25, %cst_19 {dimension_numbers = #tpu.dot_dimension_numbers<[1], [0], [0], [1], [0, 0, 1, 1], [], []>} : vector<32x16xf32>, vector<16x32xf32>, vector<32x32xf32> -> vector<32x32xf32>
    %c4 = arith.constant 4 : index
    %c0_20 = arith.constant 0 : index
    %c0_21 = arith.constant 0 : index
    %27 = vector.load %arg4[%c4, %c0_20, %c0_21] : memref<8x32x32xf32, #tpu.memory_space<vmem>>, vector<1x32x32xf32>
    %28 = vector.shape_cast %27 : vector<1x32x32xf32> to vector<32x32xf32>
    %29 = vector.shape_cast %26 : vector<32x32xf32> to vector<1x32x32xf32>
    tpu.vector_store %arg4[%c4, %c0_20, %c0_21], %29 {strides = array<i32>} : memref<8x32x32xf32, #tpu.memory_space<vmem>>, vector<1x32x32xf32>,
    %30 = vector.extract_strided_slice %4 {offsets = [80, 0], sizes = [16, 32], strides = [1, 1]} : vector<128x32xf32> to vector<16x32xf32>
    %cst_22 = arith.constant dense<0.000000e+00> : vector<32x32xf32>
    %31 = tpu.matmul %1, %30, %cst_22 {dimension_numbers = #tpu.dot_dimension_numbers<[1], [0], [0], [1], [0, 0, 1, 1], [], []>} : vector<32x16xf32>, vector<16x32xf32>, vector<32x32xf32> -> vector<32x32xf32>
    %c5 = arith.constant 5 : index
    %c0_23 = arith.constant 0 : index
    %c0_24 = arith.constant 0 : index
    %32 = vector.load %arg4[%c5, %c0_23, %c0_24] : memref<8x32x32xf32, #tpu.memory_space<vmem>>, vector<1x32x32xf32>
    %33 = vector.shape_cast %32 : vector<1x32x32xf32> to vector<32x32xf32>
    %34 = vector.shape_cast %31 : vector<32x32xf32> to vector<1x32x32xf32>
    tpu.vector_store %arg4[%c5, %c0_23, %c0_24], %34 {strides = array<i32>} : memref<8x32x32xf32, #tpu.memory_space<vmem>>, vector<1x32x32xf32>,
    %35 = vector.extract_strided_slice %4 {offsets = [96, 0], sizes = [16, 32], strides = [1, 1]} : vector<128x32xf32> to vector<16x32xf32>
    %cst_25 = arith.constant dense<0.000000e+00> : vector<32x32xf32>
    %36 = tpu.matmul %1, %35, %cst_25 {dimension_numbers = #tpu.dot_dimension_numbers<[1], [0], [0], [1], [0, 0, 1, 1], [], []>} : vector<32x16xf32>, vector<16x32xf32>, vector<32x32xf32> -> vector<32x32xf32>
    %c6 = arith.constant 6 : index
    %c0_26 = arith.constant 0 : index
    %c0_27 = arith.constant 0 : index
    %37 = vector.load %arg4[%c6, %c0_26, %c0_27] : memref<8x32x32xf32, #tpu.memory_space<vmem>>, vector<1x32x32xf32>
    %38 = vector.shape_cast %37 : vector<1x32x32xf32> to vector<32x32xf32>
    %39 = vector.shape_cast %36 : vector<32x32xf32> to vector<1x32x32xf32>
    tpu.vector_store %arg4[%c6, %c0_26, %c0_27], %39 {strides = array<i32>} : memref<8x32x32xf32, #tpu.memory_space<vmem>>, vector<1x32x32xf32>,
    %40 = vector.extract_strided_slice %4 {offsets = [112, 0], sizes = [16, 32], strides = [1, 1]} : vector<128x32xf32> to vector<16x32xf32>
    %cst_28 = arith.constant dense<0.000000e+00> : vector<32x32xf32>
    %41 = tpu.matmul %1, %40, %cst_28 {dimension_numbers = #tpu.dot_dimension_numbers<[1], [0], [0], [1], [0, 0, 1, 1], [], []>} : vector<32x16xf32>, vector<16x32xf32>, vector<32x32xf32> -> vector<32x32xf32>
    %c7 = arith.constant 7 : index
    %c0_29 = arith.constant 0 : index
    %c0_30 = arith.constant 0 : index
    %42 = vector.load %arg4[%c7, %c0_29, %c0_30] : memref<8x32x32xf32, #tpu.memory_space<vmem>>, vector<1x32x32xf32>
    %43 = vector.shape_cast %42 : vector<1x32x32xf32> to vector<32x32xf32>
    %44 = vector.shape_cast %41 : vector<32x32xf32> to vector<1x32x32xf32>
    tpu.vector_store %arg4[%c7, %c0_29, %c0_30], %44 {strides = array<i32>} : memref<8x32x32xf32, #tpu.memory_space<vmem>>, vector<1x32x32xf32>,
    return
  }
  func.func @transform_0(%arg0: i32) -> (i32, i32, i32) {
    %c0_i32 = arith.constant 0 : i32
    %c0_i32_0 = arith.constant 0 : i32
    %c0_i32_1 = arith.constant 0 : i32
    return %arg0, %c0_i32, %c0_i32_0 : i32, i32, i32
  }
  func.func @transform_1(%arg0: i32) -> (i32, i32) {
    %c0_i32 = arith.constant 0 : i32
    %c0_i32_0 = arith.constant 0 : i32
    %c0_i32_1 = arith.constant 0 : i32
    return %c0_i32, %c0_i32_0 : i32, i32
  }
  func.func @transform_2(%arg0: i32) -> (i32, i32) {
    %c0_i32 = arith.constant 0 : i32
    %c0_i32_0 = arith.constant 0 : i32
    %c0_i32_1 = arith.constant 0 : i32
    return %c0_i32, %c0_i32_0 : i32, i32
  }
  func.func @transform_3(%arg0: i32) -> (i32, i32, i32) {
    %c0_i32 = arith.constant 0 : i32
    %c0_i32_0 = arith.constant 0 : i32
    %c0_i32_1 = arith.constant 0 : i32
    return %arg0, %c0_i32, %c0_i32_0 : i32, i32, i32
  }
}

</mosaic_0001>

<bundles_post_ra>
// kernel: tpu_custom_call.1
= control target key start
LH: loop header
LB: loop body
LE: loop exit
PB: predicated region body
PF: predicated region fallthrough
CT: control target
= control target key end

     0   :  { %8 = vsyncpa [#allocation3], 0  ;;  %s1476_s0 = inlined_call_operand.hbm [shape: f32[8,16,16], index: 0, kind: input, shape index: {}]   ;;  %s1477_s1 = inlined_call_operand.vmem [shape: f32[32,16], index: 1, kind: input, shape index: {}]   ;;  %s1478_s2 = inlined_call_operand.vmem [shape: f32[16,32], index: 2, kind: input, shape index: {}]   ;;  %s1479_s3 = inlined_call_operand.hbm [shape: f32[8,32,32], index: 3, kind: output, shape index: {}]  }
   0x1   :  { %9 = vsyncpa [#allocation4], 0  ;;  %s1304_s12 = smov [#allocation2]   ;;  %s1256_s16 = scalar_lea.hbm %s1476_s0, 2048 }
   0x2   :  { %s15_s13 = sshll.u32 %s1304_s12, 4  ;;  %p1257_p0 = scmp.ne.s32.totalorder %s1476_s0, %s1256_s16  ;;  %s16_s13 = int_to_ptr.vmem [resolvable:$true] %s15_s13 }
   0x3   :  { %p1260_p1 = scmp.lt.u32.totalorder %s1256_s16, %s1476_s0 }
   0x5   :  { %p1262_p2 = pnand %p1260_p1, %p1257_p0 }
   0x7   :  { %1265 = shalt.err (!%p1262_p2)
}
   0x8   :  { %s1266_s21 = scalar_lea.vmem %s16_s13, 2048  ;;  %p1271_p4 = scmp.lt.s32.totalorder %s16_s13, %s16_s13 }
   0x9   :  { %p1267_p3 = scmp.ne.s32.totalorder %s16_s13, %s1266_s21  ;;  %p1272_p5 = scmp.lt.s32.totalorder %s1266_s21, %s1266_s21 }
   0xb   :  { %p1273_p6 = por %p1272_p5, %p1271_p4 }
   0xd   :  { %p1274_p7 = pnand %p1273_p6, %p1267_p3 }
   0xf   :  { %1277 = shalt.err (!%p1274_p7)
}
  0x10   :  { %s1305_s22 = smov 128   ;;  %s1306_s23 = smov 8  }
  0x11   :  { %21 = dma.hbm_to_vmem [thread:$0]  %s1476_s0, 2048, %s16_s13, [#allocation3], %s1305_s22, %s1305_s22, %s1306_s23  }
  0x12   :  { %1300 = dma.done.wait [#allocation3], 2048  }
  0x13   :  { %1301 = vsyncadd [#allocation3], 4294965248  ;;  %vm51_vm0 = vcmask 130048   ;;  %v49_v0 = vld [vmem:[%s1478_s2] sm:$0xff]  ;;  %v50_v1 = vld [vmem:[%s1478_s2 + $0x8] sm:$0xff]  ;;  %vm342_vm1 = vcmask 261120  }
  0x14   :  { %v29_v2 = vld [vmem:[#allocation2] sm:$0xff]  ;;  %v1216_v3 = vpack.c.bf16 %v50_v1, %v49_v0  ;;  %v30_v4 = vld [vmem:[#allocation2 + $0x8] sm:$0xff]  ;;  %v31_v5 = vld [vmem:[#allocation2 + $0x10] sm:$0xff] }
  0x15   :  { %1112 = vmatprep.mubr.msk.f32.mxu0 %vm51_vm0, %v29_v2  ;;  %v32_v6 = vld [vmem:[#allocation2 + $0x18] sm:$0xff]  ;;  %v33_v7 = vld [vmem:[#allocation2 + $0x20] sm:$0xff]  ;;  %v34_v8 = vld [vmem:[#allocation2 + $0x28] sm:$0xff] }
  0x16   :  { %1217 = vmatprep.subr.bf16.mxu0 %v1216_v3  ;;  %v35_v9 = vld [vmem:[#allocation2 + $0x30] sm:$0xff]  ;;  %v36_v10 = vld [vmem:[#allocation2 + $0x38] sm:$0xff]  ;;  %v37_v11 = vld [vmem:[#allocation2 + $0x40] sm:$0xff] }
  0x17   :  { %1219 = vmatpush3.bf16.msra.mxu0 %v1216_v3  ;;  %v38_v12 = vld [vmem:[#allocation2 + $0x48] sm:$0xff]  ;;  %v39_v13 = vld [vmem:[#allocation2 + $0x50] sm:$0xff]  ;;  %v40_v14 = vld [vmem:[#allocation2 + $0x58] sm:$0xff] }
  0x18   :  { %v41_v15 = vld [vmem:[#allocation2 + $0x60] sm:$0xff]  ;;  %v42_v16 = vld [vmem:[#allocation2 + $0x68] sm:$0xff]  ;;  %v43_v17 = vld [vmem:[#allocation2 + $0x70] sm:$0xff] }
  0x19   :  { %v44_v18 = vld [vmem:[#allocation2 + $0x78] sm:$0xff]  ;;  %v1368_v19 = vld [vmem:[%s1477_s1] sm:$0xff]  ;;  %v1377_v25 = vld [vmem:[%s1477_s1 + $0x8] sm:$0xff] }
  0x1a   :  { %1113 = vmatmul.mubr.msk.f32.vlgmr.msra.gmra.mrb[0].mxu0 %vm51_vm0, %v30_v4  ;;  %1140 = vmatprep.mubr.msk.f32.mxu1 %vm51_vm0, %v1368_v19  ;;  %v47_v27 = vld [vmem:[%s1477_s1 + $0x10] sm:$0xff]  ;;  %v48_v30 = vld [vmem:[%s1477_s1 + $0x18] sm:$0xff]  ;;  %s1307_s1 = smov [#allocation5]  }
  0x1b   :  { %1115 = vmatprep.mubr.msk.f32.mxu0 %vm51_vm0, %v31_v5  ;;  %s982_s9 = sshll.u32 %s1307_s1, 4  ;;  %s983_s9 = int_to_ptr.vmem [resolvable:$true] %s982_s9 }
  0x1c   :  { %s1278_s10 = scalar_lea.vmem %s983_s9, 4096  ;;  %p1283_p9 = scmp.lt.s32.totalorder %s983_s9, %s983_s9 }
  0x1d   :  { %p1279_p8 = scmp.ne.s32.totalorder %s983_s9, %s1278_s10  ;;  %p1284_p10 = scmp.lt.s32.totalorder %s1278_s10, %s1278_s10 }
  0x1e   :  { %1116 = vmatmul.mubr.msk.f32.gmra.mrb[2].mxu0 %vm51_vm0, %v32_v6 }
  0x1f   :  { %1118 = vmatprep.mubr.msk.f32.mxu0 %vm51_vm0, %v33_v7  ;;  %p1285_p11 = por %p1284_p10, %p1283_p9 }
  0x21   :  { %p1286_p12 = pnand %p1285_p11, %p1279_p8 }
  0x22   :  { %1119 = vmatmul.mubr.msk.f32.gmra.mrb[4].mxu0 %vm51_vm0, %v34_v8 }
  0x23   :  { %1121 = vmatprep.mubr.msk.f32.mxu0 %vm51_vm0, %v35_v9 }
  0x26   :  { %1122 = vmatmul.mubr.msk.f32.gmra.mrb[6].mxu0 %vm51_vm0, %v36_v10 }
  0x27   :  { %1124 = vmatprep.mubr.msk.f32.mxu0 %vm51_vm0, %v37_v11 }
  0x2a   :  { %1125 = vmatmul.mubr.msk.f32.gmra.mrb[8].mxu0 %vm51_vm0, %v38_v12 }
  0x2b   :  { %1127 = vmatprep.mubr.msk.f32.mxu0 %vm51_vm0, %v39_v13 }
  0x2e   :  { %1128 = vmatmul.mubr.msk.f32.gmra.mrb[10].mxu0 %vm51_vm0, %v40_v14 }
  0x2f   :  { %1130 = vmatprep.mubr.msk.f32.mxu0 %vm51_vm0, %v41_v15 }
  0x32   :  { %1131 = vmatmul.mubr.msk.f32.gmra.mrb[12].mxu0 %vm51_vm0, %v42_v16 }
  0x33   :  { %1133 = vmatprep.mubr.msk.f32.mxu0 %vm51_vm0, %v43_v17 }
  0x36   :  { %1134 = vmatmul.mubr.msk.f32.gmra.mrb[14].mxu0 %vm51_vm0, %v44_v18 }
  0x37   :  { %1180 = vmatprep.mubr.msk.f32.mxu0 %vm51_vm0, %v1368_v19 }
  0xed   :  { %v1114_v20 = vpop.f32.mrb[0].mxu0 }
  0xee   :  { %v166_v21 = vpop.f32.mrb[1].mxu0 }
  0xef   :  { %v1220_v22 = vpack.c.bf16 %v1114_v20, %v166_v21 }
  0xf1   :  { %v1117_v23 = vpop.f32.mrb[2].mxu0  ;;  %1221 = vmatprep.subr.bf16.mxu1 %v1220_v22 }
  0xf2   :  { %v176_v24 = vpop.f32.mrb[3].mxu0  ;;  %1223 = vmatpush3.bf16.msra.mxu1 %v1220_v22 }
  0xf3   :  { %v1224_v26 = vpack.c.bf16 %v1117_v23, %v176_v24 }
  0xf5   :  { %v1120_v28 = vpop.f32.mrb[4].mxu0  ;;  %1141 = vmatmul.mubr.msk.f32.vlgmr.msra.gmra.mrb[0].mxu1 %vm51_vm0, %v1377_v25  ;;  %1225 = vmatprep.subr.bf16.mxu1 %v1224_v26 }
  0xf6   :  { %v186_v29 = vpop.f32.mrb[5].mxu0  ;;  %1227 = vmatpush3.bf16.msra.mxu1 %v1224_v26  ;;  %1143 = vmatprep.mubr.msk.f32.mxu1 %vm51_vm0, %v47_v27 }
  0xf7   :  { %v1228_v31 = vpack.c.bf16 %v1120_v28, %v186_v29 }
  0xf9   :  { %v1123_v32 = vpop.f32.mrb[6].mxu0  ;;  %1144 = vmatmul.mubr.msk.f32.gmra.mrb[2].mxu1 %vm51_vm0, %v48_v30  ;;  %1229 = vmatprep.subr.bf16.mxu1 %v1228_v31 }
  0xfa   :  { %v196_v33 = vpop.f32.mrb[7].mxu0  ;;  %1150 = vmatprep.mubr.msk.f32.mxu1 %vm51_vm0, %v1368_v19 }
  0xfb   :  { %v1232_v34 = vpack.c.bf16 %v1123_v32, %v196_v33 }
  0xfd   :  { %v1126_v35 = vpop.f32.mrb[8].mxu0  ;;  %1151 = vmatmul.mubr.msk.f32.vlgmr.msra.gmra.mrb[4].mxu1 %vm51_vm0, %v1377_v25 }
  0xfe   :  { %1231 = vmatpush3.bf16.msra.mxu1 %v1228_v31  ;;  %v206_v36 = vpop.f32.mrb[9].mxu0  ;;  %1153 = vmatprep.mubr.msk.f32.mxu1 %vm51_vm0, %v47_v27 }
  0xff   :  { %v1236_v37 = vpack.c.bf16 %v1126_v35, %v206_v36  ;;  %1233 = vmatprep.subr.bf16.mxu1 %v1232_v34 }
 0x101   :  { %1154 = vmatmul.mubr.msk.f32.gmra.mrb[6].mxu1 %vm51_vm0, %v48_v30  ;;  %1237 = vmatprep.subr.bf16.mxu0 %v1236_v37  ;;  %v1129_v38 = vpop.f32.mrb[10].mxu0 }
 0x102   :  { %1239 = vmatpush3.bf16.msra.mxu0 %v1236_v37  ;;  %1160 = vmatprep.mubr.msk.f32.mxu1 %vm51_vm0, %v1368_v19  ;;  %v216_v39 = vpop.f32.mrb[11].mxu0 }
 0x103   :  { %v1240_v40 = vpack.c.bf16 %v1129_v38, %v216_v39 }
 0x105   :  { %1161 = vmatmul.mubr.msk.f32.vlgmr.msra.gmra.mrb[8].mxu1 %vm51_vm0, %v1377_v25  ;;  %v1132_v41 = vpop.f32.mrb[12].mxu0  ;;  %1181 = vmatmul.mubr.msk.f32.vlgmr.msra.gmra.mrb[16].mxu0 %vm51_vm0, %v1377_v25 }
 0x106   :  { %1235 = vmatpush3.bf16.msra.mxu1 %v1232_v34  ;;  %1163 = vmatprep.mubr.msk.f32.mxu1 %vm51_vm0, %v47_v27  ;;  %v226_v42 = vpop.f32.mrb[13].mxu0 }
 0x107   :  { %1241 = vmatprep.subr.bf16.mxu1 %v1240_v40  ;;  %v1244_v43 = vpack.c.bf16 %v1132_v41, %v226_v42  ;;  %1183 = vmatprep.mubr.msk.f32.mxu0 %vm51_vm0, %v47_v27 }
 0x109   :  { %1164 = vmatmul.mubr.msk.f32.gmra.mrb[10].mxu1 %vm51_vm0, %v48_v30  ;;  %v1135_v44 = vpop.f32.mrb[14].mxu0  ;;  %1245 = vmatprep.subr.bf16.mxu0 %v1244_v43 }
 0x10a   :  { %1170 = vmatprep.mubr.msk.f32.mxu1 %vm51_vm0, %v1368_v19  ;;  %v236_v45 = vpop.f32.mrb[15].mxu0  ;;  %1247 = vmatpush3.bf16.msra.mxu0 %v1244_v43 }
 0x10b   :  { %v1248_v46 = vpack.c.bf16 %v1135_v44, %v236_v45  ;;  %1184 = vmatmul.mubr.msk.f32.gmra.mrb[18].mxu0 %vm51_vm0, %v48_v30 }
 0x10c   :  { %1200 = vmatprep.mubr.msk.f32.mxu0 %vm51_vm0, %v1368_v19 }
 0x10d   :  { %1171 = vmatmul.mubr.msk.f32.vlgmr.msra.gmra.mrb[12].mxu1 %vm51_vm0, %v1377_v25 }
 0x10e   :  { %1243 = vmatpush3.bf16.msra.mxu1 %v1240_v40  ;;  %1173 = vmatprep.mubr.msk.f32.mxu1 %vm51_vm0, %v47_v27 }
 0x10f   :  { %1249 = vmatprep.subr.bf16.mxu1 %v1248_v46  ;;  %1201 = vmatmul.mubr.msk.f32.vlgmr.msra.gmra.mrb[20].mxu0 %vm51_vm0, %v1377_v25 }
 0x110   :  { %1203 = vmatprep.mubr.msk.f32.mxu0 %vm51_vm0, %v47_v27 }
 0x111   :  { %1174 = vmatmul.mubr.msk.f32.gmra.mrb[14].mxu1 %vm51_vm0, %v48_v30 }
 0x112   :  { %1190 = vmatprep.mubr.msk.f32.mxu1 %vm51_vm0, %v1368_v19 }
 0x113   :  { %1204 = vmatmul.mubr.msk.f32.gmra.mrb[22].mxu0 %vm51_vm0, %v48_v30 }
 0x115   :  { %1191 = vmatmul.mubr.msk.f32.vlgmr.msra.gmra.mrb[16].mxu1 %vm51_vm0, %v1377_v25 }
 0x116   :  { %1251 = vmatpush3.bf16.msra.mxu1 %v1248_v46  ;;  %1193 = vmatprep.mubr.msk.f32.mxu1 %vm51_vm0, %v47_v27 }
 0x119   :  { %1194 = vmatmul.mubr.msk.f32.gmra.mrb[18].mxu1 %vm51_vm0, %v48_v30 }
 0x11a   :  { %1210 = vmatprep.mubr.msk.f32.mxu1 %vm51_vm0, %v1368_v19 }
 0x11d   :  { %1211 = vmatmul.mubr.msk.f32.vlgmr.msra.gmra.mrb[20].mxu1 %vm51_vm0, %v1377_v25 }
 0x11e   :  { %1213 = vmatprep.mubr.msk.f32.mxu1 %vm51_vm0, %v47_v27 }
 0x121   :  { %1214 = vmatmul.mubr.msk.f32.gmra.mrb[22].mxu1 %vm51_vm0, %v48_v30 }
 0x1c8   :  { %v1142_v47 = vpop.f32.mrb[0].mxu1 }
 0x1c9   :  { %344 = vst.msk [vmem:[#allocation5 + $0x8] sm:$0xff] %vm342_vm1, %v1142_v47  ;;  %v323_v48 = vpop.f32.mrb[1].mxu1 }
 0x1ca   :  { %343 = vst.msk [vmem:[#allocation5] sm:$0xff] %vm342_vm1, %v323_v48 }
 0x1cc   :  { %v1145_v49 = vpop.f32.mrb[2].mxu1 }
 0x1cd   :  { %346 = vst.msk [vmem:[#allocation5 + $0x18] sm:$0xff] %vm342_vm1, %v1145_v49  ;;  %v333_v50 = vpop.f32.mrb[3].mxu1 }
 0x1ce   :  { %345 = vst.msk [vmem:[#allocation5 + $0x10] sm:$0xff] %vm342_vm1, %v333_v50 }
 0x1d0   :  { %v1152_v51 = vpop.f32.mrb[4].mxu1 }
 0x1d1   :  { %434 = vst.msk [vmem:[#allocation5 + $0x28] sm:$0xff] %vm342_vm1, %v1152_v51  ;;  %v413_v52 = vpop.f32.mrb[5].mxu1 }
 0x1d2   :  { %433 = vst.msk [vmem:[#allocation5 + $0x20] sm:$0xff] %vm342_vm1, %v413_v52 }
 0x1d4   :  { %v1155_v53 = vpop.f32.mrb[6].mxu1 }
 0x1d5   :  { %436 = vst.msk [vmem:[#allocation5 + $0x38] sm:$0xff] %vm342_vm1, %v1155_v53  ;;  %v423_v54 = vpop.f32.mrb[7].mxu1 }
 0x1d6   :  { %435 = vst.msk [vmem:[#allocation5 + $0x30] sm:$0xff] %vm342_vm1, %v423_v54 }
 0x1d8   :  { %v1162_v55 = vpop.f32.mrb[8].mxu1  ;;  %v1182_v56 = vpop.f32.mrb[16].mxu0 }
 0x1d9   :  { %524 = vst.msk [vmem:[#allocation5 + $0x48] sm:$0xff] %vm342_vm1, %v1162_v55  ;;  %v503_v57 = vpop.f32.mrb[9].mxu1  ;;  %704 = vst.msk [vmem:[#allocation5 + $0x88] sm:$0xff] %vm342_vm1, %v1182_v56  ;;  %v683_v58 = vpop.f32.mrb[17].mxu0 }
 0x1da   :  { %523 = vst.msk [vmem:[#allocation5 + $0x40] sm:$0xff] %vm342_vm1, %v503_v57  ;;  %703 = vst.msk [vmem:[#allocation5 + $0x80] sm:$0xff] %vm342_vm1, %v683_v58 }
 0x1dc   :  { %v1165_v59 = vpop.f32.mrb[10].mxu1 }
 0x1dd   :  { %526 = vst.msk [vmem:[#allocation5 + $0x58] sm:$0xff] %vm342_vm1, %v1165_v59  ;;  %v513_v60 = vpop.f32.mrb[11].mxu1 }
 0x1de   :  { %525 = vst.msk [vmem:[#allocation5 + $0x50] sm:$0xff] %vm342_vm1, %v513_v60  ;;  %v1185_v61 = vpop.f32.mrb[18].mxu0 }
 0x1df   :  { %706 = vst.msk [vmem:[#allocation5 + $0x98] sm:$0xff] %vm342_vm1, %v1185_v61  ;;  %v693_v62 = vpop.f32.mrb[19].mxu0 }
 0x1e0   :  { %v1172_v63 = vpop.f32.mrb[12].mxu1  ;;  %705 = vst.msk [vmem:[#allocation5 + $0x90] sm:$0xff] %vm342_vm1, %v693_v62 }
 0x1e1   :  { %614 = vst.msk [vmem:[#allocation5 + $0x68] sm:$0xff] %vm342_vm1, %v1172_v63  ;;  %v593_v0 = vpop.f32.mrb[13].mxu1 }
 0x1e2   :  { %613 = vst.msk [vmem:[#allocation5 + $0x60] sm:$0xff] %vm342_vm1, %v593_v0  ;;  %v1202_v1 = vpop.f32.mrb[20].mxu0 }
 0x1e3   :  { %884 = vst.msk [vmem:[#allocation5 + $0xc8] sm:$0xff] %vm342_vm1, %v1202_v1  ;;  %v863_v2 = vpop.f32.mrb[21].mxu0 }
 0x1e4   :  { %v1175_v3 = vpop.f32.mrb[14].mxu1  ;;  %883 = vst.msk [vmem:[#allocation5 + $0xc0] sm:$0xff] %vm342_vm1, %v863_v2 }
 0x1e5   :  { %616 = vst.msk [vmem:[#allocation5 + $0x78] sm:$0xff] %vm342_vm1, %v1175_v3  ;;  %v603_v4 = vpop.f32.mrb[15].mxu1 }
 0x1e6   :  { %615 = vst.msk [vmem:[#allocation5 + $0x70] sm:$0xff] %vm342_vm1, %v603_v4  ;;  %v1205_v5 = vpop.f32.mrb[22].mxu0 }
 0x1e7   :  { %886 = vst.msk [vmem:[#allocation5 + $0xd8] sm:$0xff] %vm342_vm1, %v1205_v5  ;;  %v873_v6 = vpop.f32.mrb[23].mxu0 }
 0x1e8   :  { %v1192_v7 = vpop.f32.mrb[16].mxu1  ;;  %885 = vst.msk [vmem:[#allocation5 + $0xd0] sm:$0xff] %vm342_vm1, %v873_v6 }
 0x1e9   :  { %794 = vst.msk [vmem:[#allocation5 + $0xa8] sm:$0xff] %vm342_vm1, %v1192_v7  ;;  %v773_v8 = vpop.f32.mrb[17].mxu1 }
 0x1ea   :  { %793 = vst.msk [vmem:[#allocation5 + $0xa0] sm:$0xff] %vm342_vm1, %v773_v8 }
 0x1ec   :  { %v1195_v9 = vpop.f32.mrb[18].mxu1 }
 0x1ed   :  { %796 = vst.msk [vmem:[#allocation5 + $0xb8] sm:$0xff] %vm342_vm1, %v1195_v9  ;;  %v783_v10 = vpop.f32.mrb[19].mxu1 }
 0x1ee   :  { %795 = vst.msk [vmem:[#allocation5 + $0xb0] sm:$0xff] %vm342_vm1, %v783_v10 }
 0x1f0   :  { %v1212_v11 = vpop.f32.mrb[20].mxu1 }
 0x1f1   :  { %974 = vst.msk [vmem:[#allocation5 + $0xe8] sm:$0xff] %vm342_vm1, %v1212_v11  ;;  %v953_v12 = vpop.f32.mrb[21].mxu1 }
 0x1f2   :  { %973 = vst.msk [vmem:[#allocation5 + $0xe0] sm:$0xff] %vm342_vm1, %v953_v12 }
 0x1f4   :  { %v1215_v13 = vpop.f32.mrb[22].mxu1 }
 0x1f5   :  { %976 = vst.msk [vmem:[#allocation5 + $0xf8] sm:$0xff] %vm342_vm1, %v1215_v13  ;;  %v963_v14 = vpop.f32.mrb[23].mxu1 }
 0x1f6   :  { %975 = vst.msk [vmem:[#allocation5 + $0xf0] sm:$0xff] %vm342_vm1, %v963_v14 }
 0x1f7   :  { %1289 = shalt.err (!%p1286_p12)
}
 0x1f8   :  { %s1290_s13 = scalar_lea.hbm %s1479_s3, 4096 }
 0x1f9   :  { %p1291_p13 = scmp.ne.s32.totalorder %s1479_s3, %s1290_s13  ;;  %p1294_p0 = scmp.lt.u32.totalorder %s1290_s13, %s1479_s3 }
 0x1fb   :  { %p1296_p1 = pnand %p1294_p0, %p1291_p13 }
 0x1fd   :  { %1299 = shalt.err (!%p1296_p1)
}
 0x1fe   :  { %988 = dma.vmem_to_hbm [thread:$0]  %s983_s9, 4096, %s1479_s3, [#allocation4], %s1305_s22, %s1305_s22, %s1306_s23  }
 0x1ff   :  { %1302 = dma.done.wait [#allocation4], 4096  }
 0x200   :  { %1303 = vsyncadd [#allocation4], 4294963200 }
 0x201   :  { %992 = vsyncpa [#allocation3], 1 }
 0x202   :  { %993 = vsyncpa [#allocation4], 1 }

</bundles_post_ra>
